<compile_context>
chip_gen: v7x
topology: tpu7x:2x2x1
jax: 0.10.0
libtpu: 0.0.40
codegen_flags: <defaults>
</compile_context>

<pallas_src>
import functools

import jax
import jax.numpy as jnp
import numpy as np
from jax.experimental import pallas as pl
from jax.experimental.pallas import tpu as pltpu

LOSS_ALPHA = 0.5   # cfg.loss_alpha (deterministic, in-script)


def _round_up(x, m):
    return ((x + m - 1) // m) * m


def _aerpp_loss_kernel(time_pred_ref, tgt_ref, logp_ref, w_ref, out_ref,
                       acc_sq, acc_num, acc_den, *, alpha, batch):
    step = pl.program_id(0)

    @pl.when(step == 0)
    def _init():
        acc_sq[...] = jnp.zeros_like(acc_sq)
        acc_num[...] = jnp.zeros_like(acc_num)
        acc_den[...] = jnp.zeros_like(acc_den)

    tgt = tgt_ref[...]                                   # (TB, 2) f32

    # ---- time MSE partial ---------------------------------------------------
    tdiff = time_pred_ref[...] - tgt[:, 0:1]             # (TB, 1)
    acc_sq[...] += jnp.sum(tdiff * tdiff, keepdims=True)

    # ---- weighted NLL partial (fused mask: one pass, one reduce pair) -------
    tb, c = logp_ref.shape
    classes = jax.lax.broadcasted_iota(jnp.int32, (tb, c), 1)   # class id per lane
    evt = tgt[:, 1:2].astype(jnp.int32)                  # (TB, 1), trunc like .long()
    wmask = jnp.where(classes == evt, w_ref[...], 0.0)   # (TB, C): w[t_i] on the hit lane
    acc_num[...] += jnp.sum(wmask * logp_ref[...], keepdims=True)
    acc_den[...] += jnp.sum(wmask, keepdims=True)

    # ---- finalize: single SMEM (3,) output -----------------------------------
    @pl.when(step == pl.num_programs(0) - 1)
    def _finalize():
        time_loss = acc_sq[...] * (1.0 / batch)                  # (1,1)
        event_loss = -(acc_num[...] / acc_den[...])              # (1,1)
        total = alpha * time_loss + event_loss
        out_ref[0] = time_loss[0, 0]
        out_ref[1] = event_loss[0, 0]
        out_ref[2] = total[0, 0]


def aerpp_loss(output, target, class_weight, *, alpha=LOSS_ALPHA):
    """output = (time_pred [B], event_logprobs [B, C]); target [B, 2] float.

    Returns (time_loss, event_loss, alpha*time_loss + event_loss) as scalars.
    """
    time_pred, event_logp = output
    B, C = event_logp.shape

    # Batch tile: multiple of 8; cap the logp tile at ~2 MiB so double buffering
    # fits comfortably in scoped VMEM on every generation (incl. v7x 64 MiB).
    max_tb = max(8, min(512, ((2 * 1024 * 1024) // (C * 4)) // 8 * 8))
    tb = min(max_tb, _round_up(B, 8))
    nb = -(-B // tb)
    bp = nb * tb

    tp = time_pred.astype(jnp.float32).reshape(B, 1)
    tg = target.astype(jnp.float32)                      # raw (B, 2), split in-kernel
    lp = event_logp.astype(jnp.float32)
    w = class_weight.astype(jnp.float32).reshape(1, C)

    if bp != B:
        pad = bp - B
        # pad target with -1 (one-hot never matches -> zero NLL contribution)
        # and time_pred with -1 so the padded time diff is exactly zero.
        tp = jnp.pad(tp, ((0, pad), (0, 0)), constant_values=-1.0)
        tg = jnp.pad(tg, ((0, pad), (0, 0)), constant_values=-1.0)
        lp = jnp.pad(lp, ((0, pad), (0, 0)), constant_values=0.0)

    out = pl.pallas_call(
        functools.partial(_aerpp_loss_kernel, alpha=float(alpha), batch=int(B)),
        out_shape=jax.ShapeDtypeStruct((3,), jnp.float32),
        grid_spec=pltpu.PrefetchScalarGridSpec(
            num_scalar_prefetch=0,
            grid=(nb,),
            in_specs=[
                pl.BlockSpec((tb, 1), lambda i: (i, 0)),   # time predictions
                pl.BlockSpec((tb, 2), lambda i: (i, 0)),   # raw target (time, event)
                pl.BlockSpec((tb, C), lambda i: (i, 0)),   # event log-probs
                pl.BlockSpec((1, C), lambda i: (0, 0)),    # class weights (resident)
            ],
            out_specs=pl.BlockSpec(memory_space=pltpu.MemorySpace.SMEM),
            scratch_shapes=[pltpu.VMEM((1, 1), jnp.float32)] * 3,
        ),
        compiler_params=pltpu.CompilerParams(
            dimension_semantics=("arbitrary",)),
        cost_estimate=pl.CostEstimate(
            flops=int(B * (3 * C + 4)),
            transcendentals=0,
            bytes_accessed=int(bp * (C + 3) * 4 + C * 4 + 12),
        ),
    )(tp, tg, lp, w)

    # TODO(synk): for very large B on v7x, split the reduction across the two
    # TensorCores (per-core partials + tiny combine) instead of one serial grid.
    return out[0], out[1], out[2]


def _reference(output, target, class_weight, alpha=LOSS_ALPHA):
    time_pred, event_logp = output
    time_target = target[:, 0].astype(jnp.float32)
    event_target = target[:, 1].astype(jnp.int32)
    time_loss = jnp.mean((time_pred - time_target) ** 2)
    w = class_weight[event_target]
    picked = event_logp[jnp.arange(event_logp.shape[0]), event_target]
    event_loss = -jnp.sum(w * picked) / jnp.sum(w)
    return time_loss, event_loss, alpha * time_loss + event_loss


if __name__ == "__main__":
    B, C = 8, 16  # batch, number of event classes

    key = jax.random.PRNGKey(0)
    k1, k2, k3, k4 = jax.random.split(key, 4)

    # Deterministic "event2index" statistics: counts -> weight = sum(cnt)/cnt
    counts = jnp.arange(1, C + 1, dtype=jnp.float32)
    class_weight = jnp.sum(counts) / counts                     # (C,)

    # Model outputs: time prediction [B] and event log-probabilities [B, C]
    time_pred = jax.random.normal(k1, (B,), dtype=jnp.float32)
    logits = jax.random.normal(k2, (B, C), dtype=jnp.float32)
    event_logp = jax.nn.log_softmax(logits, axis=-1)

    # Target [B, 2]: column 0 = time (float), column 1 = event index
    time_target = jax.random.normal(k3, (B,), dtype=jnp.float32)
    event_target = jax.random.randint(k4, (B,), 0, C).astype(jnp.float32)
    target = jnp.stack([time_target, event_target], axis=1)     # (B, 2)

    out = aerpp_loss((time_pred, event_logp), target, class_weight)
    out = jax.block_until_ready(out)

    ref = _reference((time_pred, event_logp), target, class_weight)
    np.testing.assert_allclose(np.array(out), np.array(ref), rtol=1e-5, atol=1e-5)

    print("KERNEL_OK")
</pallas_src>

<mosaic_0001>
module attributes {stable_mosaic.version = 11 : i64} {
  func.func @_aerpp_loss_kernel(%arg0: i32, %arg1: memref<8x1xf32, #tpu.memory_space<vmem>>, %arg2: memref<8x2xf32, #tpu.memory_space<vmem>>, %arg3: memref<8x16xf32, #tpu.memory_space<vmem>>, %arg4: memref<1x16xf32, #tpu.memory_space<vmem>>, %arg5: memref<3xf32, #tpu.memory_space<smem>>, %arg6: memref<1x1xf32, #tpu.memory_space<vmem>>, %arg7: memref<1x1xf32, #tpu.memory_space<vmem>>, %arg8: memref<1x1xf32, #tpu.memory_space<vmem>>) attributes {dimension_semantics = [#tpu.dimension_semantics<arbitrary>], iteration_bounds = array<i64: 1>, scalar_prefetch = 0 : i64, scratch_operands = 3 : i64, tpu.core_type = #tpu.core_type<tc>, window_params = [{transform_indices = @transform_0, window_bounds = array<i64: 8, 1>}, {transform_indices = @transform_1, window_bounds = array<i64: 8, 2>}, {transform_indices = @transform_2, window_bounds = array<i64: 8, 16>}, {pipeline_mode = #tpu.pipeline_mode<synchronous>, transform_indices = @transform_3, window_bounds = array<i64: 1, 16>}, {transform_indices = @transform_4, window_bounds = array<i64: 3>}]} {
    %c0_i32 = arith.constant 0 : i32
    %0 = arith.cmpi eq, %arg0, %c0_i32 : i32
    %1 = arith.extui %0 : i1 to i32
    %c0_i32_0 = arith.constant 0 : i32
    %2 = arith.cmpi ne, %1, %c0_i32_0 : i32
    scf.if %2 {
      %cst_25 = arith.constant 0.000000e+00 : f32
      %47 = vector.broadcast %cst_25 : f32 to vector<1x1xf32>
      %c0_26 = arith.constant 0 : index
      %c0_27 = arith.constant 0 : index
      %48 = vector.load %arg6[%c0_26, %c0_27] : memref<1x1xf32, #tpu.memory_space<vmem>>, vector<1x1xf32>
      tpu.vector_store %arg6[%c0_26, %c0_27], %47 {strides = array<i32>} : memref<1x1xf32, #tpu.memory_space<vmem>>, vector<1x1xf32>,
      %cst_28 = arith.constant 0.000000e+00 : f32
      %49 = vector.broadcast %cst_28 : f32 to vector<1x1xf32>
      %c0_29 = arith.constant 0 : index
      %c0_30 = arith.constant 0 : index
      %50 = vector.load %arg7[%c0_29, %c0_30] : memref<1x1xf32, #tpu.memory_space<vmem>>, vector<1x1xf32>
      tpu.vector_store %arg7[%c0_29, %c0_30], %49 {strides = array<i32>} : memref<1x1xf32, #tpu.memory_space<vmem>>, vector<1x1xf32>,
      %cst_31 = arith.constant 0.000000e+00 : f32
      %51 = vector.broadcast %cst_31 : f32 to vector<1x1xf32>
      %c0_32 = arith.constant 0 : index
      %c0_33 = arith.constant 0 : index
      %52 = vector.load %arg8[%c0_32, %c0_33] : memref<1x1xf32, #tpu.memory_space<vmem>>, vector<1x1xf32>
      tpu.vector_store %arg8[%c0_32, %c0_33], %51 {strides = array<i32>} : memref<1x1xf32, #tpu.memory_space<vmem>>, vector<1x1xf32>,
    } else {
    }
    %c0 = arith.constant 0 : index
    %c0_1 = arith.constant 0 : index
    %3 = vector.load %arg2[%c0, %c0_1] : memref<8x2xf32, #tpu.memory_space<vmem>>, vector<8x2xf32>
    %c0_2 = arith.constant 0 : index
    %c0_3 = arith.constant 0 : index
    %4 = vector.load %arg1[%c0_2, %c0_3] : memref<8x1xf32, #tpu.memory_space<vmem>>, vector<8x1xf32>
    %5 = vector.extract_strided_slice %3 {offsets = [0, 0], sizes = [8, 1], strides = [1, 1]} : vector<8x2xf32> to vector<8x1xf32>
    %6 = arith.subf %4, %5 : vector<8x1xf32>
    %c0_4 = arith.constant 0 : index
    %c0_5 = arith.constant 0 : index
    %7 = vector.load %arg6[%c0_4, %c0_5] : memref<1x1xf32, #tpu.memory_space<vmem>>, vector<1x1xf32>
    %8 = arith.mulf %6, %6 : vector<8x1xf32>
    %9 = vector.shape_cast %8 : vector<8x1xf32> to vector<1x8x1xf32>
    %cst = arith.constant dense<0.000000e+00> : vector<1xf32>
    %10 = vector.multi_reduction <add>, %9, %cst [1, 2] : vector<1x8x1xf32> to vector<1xf32>
    %11 = vector.shape_cast %10 : vector<1xf32> to vector<1x1x1xf32>
    %12 = vector.extract %11[0, 0, 0] : f32 from vector<1x1x1xf32>
    %13 = vector.broadcast %12 : f32 to vector<1x1xf32>
    %14 = arith.addf %7, %13 : vector<1x1xf32>
    %c0_6 = arith.constant 0 : index
    %c0_7 = arith.constant 0 : index
    %15 = vector.load %arg6[%c0_6, %c0_7] : memref<1x1xf32, #tpu.memory_space<vmem>>, vector<1x1xf32>
    tpu.vector_store %arg6[%c0_6, %c0_7], %14 {strides = array<i32>} : memref<1x1xf32, #tpu.memory_space<vmem>>, vector<1x1xf32>,
    %16 = tpu.iota {dimensions = array<i32: 1>} : vector<8x16xi32>
    %17 = vector.extract_strided_slice %3 {offsets = [0, 1], sizes = [8, 1], strides = [1, 1]} : vector<8x2xf32> to vector<8x1xf32>
    %18 = arith.fptosi %17 : vector<8x1xf32> to vector<8x1xi32>
    %19 = vector.broadcast %18 : vector<8x1xi32> to vector<8x16xi32>
    %20 = arith.cmpi eq, %16, %19 : vector<8x16xi32>
    %c0_8 = arith.constant 0 : index
    %c0_9 = arith.constant 0 : index
    %21 = vector.load %arg4[%c0_8, %c0_9] : memref<1x16xf32, #tpu.memory_space<vmem>>, vector<1x16xf32>
    %cst_10 = arith.constant 0.000000e+00 : f32
    %22 = vector.shape_cast %21 : vector<1x16xf32> to vector<1x16xf32>
    %23 = vector.broadcast %22 : vector<1x16xf32> to vector<8x16xf32>
    %24 = vector.broadcast %cst_10 : f32 to vector<8x16xf32>
    %25 = arith.select %20, %23, %24 : vector<8x16xi1>, vector<8x16xf32>
    %c0_11 = arith.constant 0 : index
    %c0_12 = arith.constant 0 : index
    %26 = vector.load %arg7[%c0_11, %c0_12] : memref<1x1xf32, #tpu.memory_space<vmem>>, vector<1x1xf32>
    %c0_13 = arith.constant 0 : index
    %c0_14 = arith.constant 0 : index
    %27 = vector.load %arg3[%c0_13, %c0_14] : memref<8x16xf32, #tpu.memory_space<vmem>>, vector<8x16xf32>
    %28 = arith.mulf %25, %27 : vector<8x16xf32>
    %29 = vector.shape_cast %28 : vector<8x16xf32> to vector<1x8x16xf32>
    %cst_15 = arith.constant dense<0.000000e+00> : vector<1xf32>
    %30 = vector.multi_reduction <add>, %29, %cst_15 [1, 2] : vector<1x8x16xf32> to vector<1xf32>
    %31 = vector.shape_cast %30 : vector<1xf32> to vector<1x1x1xf32>
    %32 = vector.extract %31[0, 0, 0] : f32 from vector<1x1x1xf32>
    %33 = vector.broadcast %32 : f32 to vector<1x1xf32>
    %34 = arith.addf %26, %33 : vector<1x1xf32>
    %c0_16 = arith.constant 0 : index
    %c0_17 = arith.constant 0 : index
    %35 = vector.load %arg7[%c0_16, %c0_17] : memref<1x1xf32, #tpu.memory_space<vmem>>, vector<1x1xf32>
    tpu.vector_store %arg7[%c0_16, %c0_17], %34 {strides = array<i32>} : memref<1x1xf32, #tpu.memory_space<vmem>>, vector<1x1xf32>,
    %c0_18 = arith.constant 0 : index
    %c0_19 = arith.constant 0 : index
    %36 = vector.load %arg8[%c0_18, %c0_19] : memref<1x1xf32, #tpu.memory_space<vmem>>, vector<1x1xf32>
    %37 = vector.shape_cast %25 : vector<8x16xf32> to vector<1x8x16xf32>
    %cst_20 = arith.constant dense<0.000000e+00> : vector<1xf32>
    %38 = vector.multi_reduction <add>, %37, %cst_20 [1, 2] : vector<1x8x16xf32> to vector<1xf32>
    %39 = vector.shape_cast %38 : vector<1xf32> to vector<1x1x1xf32>
    %40 = vector.extract %39[0, 0, 0] : f32 from vector<1x1x1xf32>
    %41 = vector.broadcast %40 : f32 to vector<1x1xf32>
    %42 = arith.addf %36, %41 : vector<1x1xf32>
    %c0_21 = arith.constant 0 : index
    %c0_22 = arith.constant 0 : index
    %43 = vector.load %arg8[%c0_21, %c0_22] : memref<1x1xf32, #tpu.memory_space<vmem>>, vector<1x1xf32>
    tpu.vector_store %arg8[%c0_21, %c0_22], %42 {strides = array<i32>} : memref<1x1xf32, #tpu.memory_space<vmem>>, vector<1x1xf32>,
    %c0_i32_23 = arith.constant 0 : i32
    %44 = arith.cmpi eq, %arg0, %c0_i32_23 : i32
    %45 = arith.extui %44 : i1 to i32
    %c0_i32_24 = arith.constant 0 : i32
    %46 = arith.cmpi ne, %45, %c0_i32_24 : i32
    scf.if %46 {
      %c0_25 = arith.constant 0 : index
      %c0_26 = arith.constant 0 : index
      %47 = vector.load %arg6[%c0_25, %c0_26] : memref<1x1xf32, #tpu.memory_space<vmem>>, vector<1x1xf32>
      %cst_27 = arith.constant 1.250000e-01 : f32
      %48 = vector.broadcast %cst_27 : f32 to vector<1x1xf32>
      %49 = arith.mulf %47, %48 : vector<1x1xf32>
      %c0_28 = arith.constant 0 : index
      %c0_29 = arith.constant 0 : index
      %50 = vector.load %arg7[%c0_28, %c0_29] : memref<1x1xf32, #tpu.memory_space<vmem>>, vector<1x1xf32>
      %c0_30 = arith.constant 0 : index
      %c0_31 = arith.constant 0 : index
      %51 = vector.load %arg8[%c0_30, %c0_31] : memref<1x1xf32, #tpu.memory_space<vmem>>, vector<1x1xf32>
      %52 = arith.divf %50, %51 : vector<1x1xf32>
      %cst_32 = arith.constant 0.000000e+00 : f32
      %53 = vector.broadcast %cst_32 : f32 to vector<1x1xf32>
      %54 = arith.subf %53, %52 : vector<1x1xf32>
      %cst_33 = arith.constant 5.000000e-01 : f32
      %55 = vector.broadcast %cst_33 : f32 to vector<1x1xf32>
      %56 = arith.mulf %55, %49 : vector<1x1xf32>
      %57 = arith.addf %56, %54 : vector<1x1xf32>
      %58 = vector.extract %49[0, 0] : f32 from vector<1x1xf32>
      %c0_34 = arith.constant 0 : index
      %59 = memref.load %arg5[%c0_34] : memref<3xf32, #tpu.memory_space<smem>>
      memref.store %58, %arg5[%c0_34] : memref<3xf32, #tpu.memory_space<smem>>
      %60 = vector.extract %54[0, 0] : f32 from vector<1x1xf32>
      %c1 = arith.constant 1 : index
      %61 = memref.load %arg5[%c1] : memref<3xf32, #tpu.memory_space<smem>>
      memref.store %60, %arg5[%c1] : memref<3xf32, #tpu.memory_space<smem>>
      %62 = vector.extract %57[0, 0] : f32 from vector<1x1xf32>
      %c2 = arith.constant 2 : index
      %63 = memref.load %arg5[%c2] : memref<3xf32, #tpu.memory_space<smem>>
      memref.store %62, %arg5[%c2] : memref<3xf32, #tpu.memory_space<smem>>
    } else {
    }
    return
  }
  func.func @transform_0(%arg0: i32) -> (i32, i32) {
    %c0_i32 = arith.constant 0 : i32
    %c0_i32_0 = arith.constant 0 : i32
    return %arg0, %c0_i32 : i32, i32
  }
  func.func @transform_1(%arg0: i32) -> (i32, i32) {
    %c0_i32 = arith.constant 0 : i32
    %c0_i32_0 = arith.constant 0 : i32
    return %arg0, %c0_i32 : i32, i32
  }
  func.func @transform_2(%arg0: i32) -> (i32, i32) {
    %c0_i32 = arith.constant 0 : i32
    %c0_i32_0 = arith.constant 0 : i32
    return %arg0, %c0_i32 : i32, i32
  }
  func.func @transform_3(%arg0: i32) -> (i32, i32) {
    %c0_i32 = arith.constant 0 : i32
    %c0_i32_0 = arith.constant 0 : i32
    %c0_i32_1 = arith.constant 0 : i32
    return %c0_i32, %c0_i32_0 : i32, i32
  }
  func.func @transform_4(%arg0: i32) -> i32 {
    %c0_i32 = arith.constant 0 : i32
    %c0_i32_0 = arith.constant 0 : i32
    return %c0_i32 : i32
  }
}

</mosaic_0001>

<bundles_post_ra>
// kernel: tpu_custom_call.1
= control target key start
LH: loop header
LB: loop body
LE: loop exit
PB: predicated region body
PF: predicated region fallthrough
CT: control target
= control target key end

     0   :  { %s217_s0 = inlined_call_operand.vmem [shape: f32[8,1], index: 0, kind: input, shape index: {}]   ;;  %s218_s1 = inlined_call_operand.vmem [shape: f32[8,2], index: 1, kind: input, shape index: {}]   ;;  %s219_s2 = inlined_call_operand.vmem [shape: f32[8,16], index: 2, kind: input, shape index: {}]   ;;  %s220_s3 = inlined_call_operand.vmem [shape: f32[1,16], index: 3, kind: input, shape index: {}]   ;;  %s221_s4 = inlined_call_operand.hbm [shape: f32[3], index: 4, kind: output, shape index: {}]  }
   0x1   :  { %v26_v0 = vld [vmem:[%s218_s1] sm:$0xff] }
   0x2   :  { %9 = vsyncpa [#allocation6], 0  ;;  %v159_v1 = vmov 1   ;;  %v129_v2 = vtrunc.f32 %v26_v0  ;;  %v27_v4 = vld [vmem:[%s217_s0] sm:$0xff]  ;;  %vm31_vm0 = vcmask 7168   ;;  %v46_v8 = vlaneseq  ;;  %s147_s27 = scalar_lea.hbm %s221_s4, 16 }
   0x3   :  { %144 = vset.pattern.permute.xlu0 %v159_v1  ;;  %v28_v5 = vsub.f32 %v27_v4, %v26_v0  ;;  %v126_v10 = vld [vmem:[%s220_s3] ss:$0 sm:$0xff]  ;;  %vm64_vm2 = vcmask 130048   ;;  %vm22_vm3 = vcmask 0   ;;  %v160_v17 = vmov 0.0   ;;  %p148_p0 = scmp.ne.s32.totalorder %s221_s4, %s147_s27  ;;  %p151_p1 = scmp.lt.u32.totalorder %s147_s27, %s221_s4 }
   0x4   :  { %v130_v3 = vcvt.f32.s32 %v129_v2  ;;  %v47_v9 = vand.u32 127, %v46_v8  ;;  %v62_v12 = vld [vmem:[%s219_s2] sm:$0xff]  ;;  %23 = vst.msk [vmem:[#allocation2] sm:$0x1] %vm22_vm3, %v160_v17  ;;  %24 = vst.msk [vmem:[#allocation3] sm:$0x1] %vm22_vm3, %v160_v17 }
   0x5   :  { %v30_v6 = vmul.f32 %v28_v5, %v28_v5  ;;  %25 = vst.msk [vmem:[#allocation4] sm:$0x1] %vm22_vm3, %v160_v17  ;;  %p153_p2 = pnand %p151_p1, %p148_p0 }
   0x6   :  { %50 = vperm.xlu0 %144, %v130_v3  }
   0x7   :  { %v32_v7 = vsel %vm31_vm0, %v30_v6, 0.0 }
   0xb   :  { %v29_v25 = vld [vmem:[#allocation2] sm:$0x1]  ;;  %v61_v44 = vld [vmem:[#allocation3] sm:$0x1] }
   0xc   :  { %v78_v47 = vld [vmem:[#allocation4] sm:$0x1] }
  0x25   :  { %33 = vadd.xlane.f32.xlu0 %v32_v7 }
  0x85   :  { %v51_v11 = vpop.permute.xlu0 %50 }
  0x86   :  { %vm52_vm1 = vcmp.eq.s32.totalorder %v47_v9, %v51_v11 }
  0x87   :  { %v60_v13 = vsel %vm52_vm1, %v126_v10, 0.0 }
  0x88   :  { %v63_v14 = vmul.f32 %v62_v12, %v60_v13  ;;  %v79_v16 = vsel %vm64_vm2, %v60_v13, 0.0 }
  0x8a   :  { %v65_v15 = vsel %vm64_vm2, %v63_v14, 0.0 }
  0x8b   :  { %66 = vadd.xlane.f32.xlu1 %v65_v15 }
  0x8f   :  { %80 = vadd.xlane.f32.xlu1 %v79_v16 }
  0xb2   :  { %v34_v18 = vpop.xlane.xlu0 %33 }
  0xb3   :  { %v35_v19 = vrot.slane %v34_v18, 4 }
  0xb5   :  { %v36_v20 = vadd.f32 %v35_v19, %v34_v18 }
  0xb7   :  { %v37_v21 = vrot.slane %v36_v20, 2 }
  0xb9   :  { %v38_v22 = vadd.f32 %v37_v21, %v36_v20 }
  0xbb   :  { %v39_v23 = vrot.slane %v38_v22, 1 }
  0xbd   :  { %v40_v24 = vadd.f32 %v39_v23, %v38_v22 }
  0xbf   :  { %127 = vpush %v40_v24 }
  0xf0   :  { %s128_s0 = spop %127 }
  0xf1   :  { %v42_v26 = vstv %s128_s0 }
  0xf2   :  { %v43_v27 = vadd.f32 %v42_v26, %v29_v25 }
  0xf4   :  { %45 = vst.msk [vmem:[#allocation2] sm:$0x1] %vm22_vm3, %v43_v27 }
  0xfb   :  { %v95_v40 = vld [vmem:[#allocation2] sm:$0x1] }
  0xfc   :  { %v96_v42 = vmul.f32 0.125, %v95_v40 }
  0xfe   :  { %v102_v55 = vmul.f32 0.5, %v96_v42 }
 0x118   :  { %v67_v28 = vpop.xlane.xlu1 %66 }
 0x119   :  { %v68_v29 = vrot.slane %v67_v28, 4 }
 0x11b   :  { %v69_v30 = vadd.f32 %v68_v29, %v67_v28 }
 0x11c   :  { %v81_v31 = vpop.xlane.xlu1 %80 }
 0x11d   :  { %v70_v32 = vrot.slane %v69_v30, 2  ;;  %v82_v33 = vrot.slane %v81_v31, 4 }
 0x11f   :  { %v83_v34 = vadd.f32 %v82_v33, %v81_v31  ;;  %v71_v35 = vadd.f32 %v70_v32, %v69_v30 }
 0x121   :  { %v84_v36 = vrot.slane %v83_v34, 2  ;;  %v72_v37 = vrot.slane %v71_v35, 1 }
 0x123   :  { %v85_v38 = vadd.f32 %v84_v36, %v83_v34  ;;  %v73_v39 = vadd.f32 %v72_v37, %v71_v35 }
 0x125   :  { %131 = vpush %v73_v39  ;;  %v86_v41 = vrot.slane %v85_v38, 1 }
 0x127   :  { %v87_v43 = vadd.f32 %v86_v41, %v85_v38 }
 0x129   :  { %133 = vpush %v87_v43 }
 0x12a   :  { %135 = vpush %v96_v42 }
 0x156   :  { %s132_s2 = spop %131 }
 0x157   :  { %v75_v45 = vstv %s132_s2 }
 0x158   :  { %v76_v46 = vadd.f32 %v75_v45, %v61_v44 }
 0x15a   :  { %77 = vst.msk [vmem:[#allocation3] sm:$0x1] %vm22_vm3, %v76_v46  ;;  %s134_s3 = spop %133 }
 0x15b   :  { %v89_v48 = vstv %s134_s3  ;;  %s136_s22 = spop %135 }
 0x15c   :  { %v90_v49 = vadd.f32 %v89_v48, %v78_v47  ;;  %106 = sst [smem:[#allocation5]] %s136_s22 }
 0x15e   :  { %91 = vst.msk [vmem:[#allocation4] sm:$0x1] %vm22_vm3, %v90_v49 }
 0x161   :  { %v97_v52 = vld [vmem:[#allocation3] sm:$0x1] }
 0x165   :  { %v98_v50 = vld [vmem:[#allocation4] sm:$0x1] }
 0x166   :  { %145 = vrcp.f32 %v98_v50 }
 0x170   :  { %v146_v51 = vpop.eup %145 }
 0x171   :  { %v100_v53 = vmul.f32 %v146_v51, %v97_v52 }
 0x173   :  { %v101_v54 = vsub.f32 0.0, %v100_v53 }
 0x175   :  { %137 = vpush %v101_v54  ;;  %v103_v56 = vadd.f32 %v102_v55, %v101_v54 }
 0x177   :  { %139 = vpush %v103_v56 }
 0x1a6   :  { %s138_s23 = spop %137 }
 0x1a7   :  { %109 = sst [smem:[#allocation5 + $0x1]] %s138_s23 }
 0x1a8   :  { %s140_s24 = spop %139 }
 0x1a9   :  { %112 = sst [smem:[#allocation5 + $0x2]] %s140_s24 }
 0x1aa   :  { %156 = shalt.err (!%p153_p2)
}
 0x1ab   :  { %s161_s6 = smov [#allocation5]  }
 0x1ac   :  { %120 = dma.smem_to_hbm %s161_s6, 16, %s221_s4, [#allocation6]  }
 0x1ad   :  { %157 = dma.done.wait [#allocation6], 16  }
 0x1ae   :  { %158 = vsyncadd [#allocation6], 4294967280 }
 0x1af   :  { %124 = sfence }
 0x1b0   :  { %125 = vsyncpa [#allocation6], 1 }

</bundles_post_ra>
